<compile_context>
chip_gen: v5e
topology: v5e:2x2
jax: 0.10.0
libtpu: 0.0.40
codegen_flags: <defaults>
</compile_context>

<pallas_src>
import math
from functools import partial

import jax
import jax.numpy as jnp
from jax.experimental import pallas as pl
from jax.experimental.pallas import tpu as pltpu

NEG = -1e9  # additive mask value (stands in for -inf; avoids NaN on fully-masked rows)
VMEM_LIMIT = 32 * 1024 * 1024  # explicit scoped-VMEM cap; safe on v5e/v6e/v7x


def _cparams(sem):
    return pltpu.CompilerParams(dimension_semantics=sem,
                                vmem_limit_bytes=VMEM_LIMIT)


def _pick_tile(n, candidates=(512, 256, 128)):
    """Largest candidate tile that evenly divides n, else the full dim."""
    for t in candidates:
        if n % t == 0:
            return t
    return n


# ----------------------------------------------------------------------------
# In-kernel helpers (traced inside each fused kernel)
# ----------------------------------------------------------------------------
def _layernorm(y, gamma, beta):
    mean = jnp.mean(y, axis=-1, keepdims=True)
    var = jnp.mean((y - mean) ** 2, axis=-1, keepdims=True)
    return (y - mean) * jax.lax.rsqrt(var + 1e-5) * gamma + beta


def _attn_core(x_res, q, k, v, bias, wo, bo, gamma, beta, nhead):
    """Per-head attention + output projection + residual + LayerNorm.
    Shapes: x_res/q [Tq,D], k/v [Tk,D], bias [Tq,Tk] or [1,Tk] (broadcast).
    fp32 math everywhere; bf16 only at MXU inputs."""
    Tq, D = q.shape
    Dh = D // nhead
    scale = 1.0 / math.sqrt(Dh)
    outs = []
    for h in range(nhead):
        q_h = (q[:, h * Dh:(h + 1) * Dh] * scale).astype(jnp.bfloat16)
        k_h = k[:, h * Dh:(h + 1) * Dh].astype(jnp.bfloat16)
        v_h = v[:, h * Dh:(h + 1) * Dh].astype(jnp.bfloat16)
        # QK^T via dot_general contracting last axes (no explicit transpose)
        s = jax.lax.dot_general(q_h, k_h, (((1,), (1,)), ((), ())),
                                preferred_element_type=jnp.float32)
        s = s + bias
        m = jnp.max(s, axis=-1, keepdims=True)
        p = jnp.exp(s - m)
        denom = jnp.sum(p, axis=-1, keepdims=True)
        o_h = jnp.dot(p.astype(jnp.bfloat16), v_h,
                      preferred_element_type=jnp.float32)
        outs.append(o_h * pl.reciprocal(denom, approx=True))
    attn = jnp.concatenate(outs, axis=-1)                      # [Tq, D]
    proj = jnp.dot(attn.astype(jnp.bfloat16), wo,
                   preferred_element_type=jnp.float32) + bo    # [Tq, D]
    return _layernorm(x_res + proj, gamma, beta)


def _ffn(x, w1, b1, w2, b2, gamma, beta):
    h = jnp.dot(x.astype(jnp.bfloat16), w1,
                preferred_element_type=jnp.float32) + b1
    h = jnp.maximum(h, 0.0)
    y = jnp.dot(h.astype(jnp.bfloat16), w2,
                preferred_element_type=jnp.float32) + b2
    return _layernorm(x + y, gamma, beta)


# ----------------------------------------------------------------------------
# Fused per-layer kernels (one pallas_call per transformer layer)
# ----------------------------------------------------------------------------
def _encoder_layer_kernel(x_ref, wqkv_ref, bqkv_ref, wo_ref, bo_ref,
                          mask_ref, kpad_ref, g1_ref, be1_ref,
                          w1_ref, b1_ref, w2_ref, b2_ref, g2_ref, be2_ref,
                          o_ref, *, nhead):
    x = x_ref[0]                                               # [T, D] fp32
    D = x.shape[-1]
    qkv = jnp.dot(x.astype(jnp.bfloat16), wqkv_ref[...],
                  preferred_element_type=jnp.float32) + bqkv_ref[...]
    bias = mask_ref[...] + kpad_ref[0]                         # [T,T] + [1,T]
    x = _attn_core(x, qkv[:, 0:D], qkv[:, D:2 * D], qkv[:, 2 * D:3 * D], bias,
                   wo_ref[...], bo_ref[...], g1_ref[...], be1_ref[...], nhead)
    o_ref[0] = _ffn(x, w1_ref[...], b1_ref[...], w2_ref[...], b2_ref[...],
                    g2_ref[...], be2_ref[...])


def _decoder_layer_kernel(y_ref, mem_ref,
                          wqkv_ref, bqkv_ref, wo1_ref, bo1_ref,
                          tmask_ref, tkpad_ref, g1_ref, be1_ref,
                          wq_ref, bq_ref, wkv_ref, bkv_ref, wo2_ref, bo2_ref,
                          mkpad_ref, g2_ref, be2_ref,
                          w1_ref, b1_ref, w2_ref, b2_ref, g3_ref, be3_ref,
                          o_ref, *, nhead):
    y = y_ref[0]                                               # [Tq, D]
    mem = mem_ref[0]                                           # [Tk, D]
    D = y.shape[-1]
    # --- masked self-attention + LN1 ---
    qkv = jnp.dot(y.astype(jnp.bfloat16), wqkv_ref[...],
                  preferred_element_type=jnp.float32) + bqkv_ref[...]
    bias = tmask_ref[...] + tkpad_ref[0]                       # [Tq,Tq] + [1,Tq]
    y = _attn_core(y, qkv[:, 0:D], qkv[:, D:2 * D], qkv[:, 2 * D:3 * D], bias,
                   wo1_ref[...], bo1_ref[...], g1_ref[...], be1_ref[...], nhead)
    # --- cross-attention (memory_mask is None in forward) + LN2 ---
    q = jnp.dot(y.astype(jnp.bfloat16), wq_ref[...],
                preferred_element_type=jnp.float32) + bq_ref[...]
    kv = jnp.dot(mem.astype(jnp.bfloat16), wkv_ref[...],
                 preferred_element_type=jnp.float32) + bkv_ref[...]
    y = _attn_core(y, q, kv[:, 0:D], kv[:, D:2 * D], mkpad_ref[0],
                   wo2_ref[...], bo2_ref[...], g2_ref[...], be2_ref[...], nhead)
    # --- FFN + LN3 ---
    o_ref[0] = _ffn(y, w1_ref[...], b1_ref[...], w2_ref[...], b2_ref[...],
                    g3_ref[...], be3_ref[...])


def _ln_kernel(x_ref, g_ref, b_ref, o_ref):
    o_ref[...] = _layernorm(x_ref[...], g_ref[...], b_ref[...])


def _ln_linear_kernel(x_ref, g_ref, b_ref, w_ref, bias_ref, o_ref):
    xn = _layernorm(x_ref[...], g_ref[...], b_ref[...])
    o_ref[...] = jnp.dot(xn.astype(jnp.bfloat16), w_ref[...],
                         preferred_element_type=jnp.float32) + bias_ref[...]


# ----------------------------------------------------------------------------
# pallas_call wrappers
# ----------------------------------------------------------------------------
def encoder_layer(x, lp, src_mask, src_kpad, nhead):
    B, T, D = x.shape
    sa, ff, ln1, ln2 = lp["self_attn"], lp["ffn"], lp["ln1"], lp["ln2"]
    FF = ff["w1"].shape[1]
    return pl.pallas_call(
        partial(_encoder_layer_kernel, nhead=nhead),
        grid=(B,),
        in_specs=[
            pl.BlockSpec((1, T, D), lambda b: (b, 0, 0)),      # x
            pl.BlockSpec((D, 3 * D), lambda b: (0, 0)),        # wqkv (bf16)
            pl.BlockSpec((1, 3 * D), lambda b: (0, 0)),        # bqkv
            pl.BlockSpec((D, D), lambda b: (0, 0)),            # wo
            pl.BlockSpec((1, D), lambda b: (0, 0)),            # bo
            pl.BlockSpec((T, T), lambda b: (0, 0)),            # attn mask [T,T]
            pl.BlockSpec((1, 1, T), lambda b: (b, 0, 0)),      # key-pad bias [B,1,T]
            pl.BlockSpec((1, D), lambda b: (0, 0)),            # ln1 gamma
            pl.BlockSpec((1, D), lambda b: (0, 0)),            # ln1 beta
            pl.BlockSpec((D, FF), lambda b: (0, 0)),           # w1
            pl.BlockSpec((1, FF), lambda b: (0, 0)),           # b1
            pl.BlockSpec((FF, D), lambda b: (0, 0)),           # w2
            pl.BlockSpec((1, D), lambda b: (0, 0)),            # b2
            pl.BlockSpec((1, D), lambda b: (0, 0)),            # ln2 gamma
            pl.BlockSpec((1, D), lambda b: (0, 0)),            # ln2 beta
        ],
        out_specs=pl.BlockSpec((1, T, D), lambda b: (b, 0, 0)),
        out_shape=jax.ShapeDtypeStruct((B, T, D), jnp.float32),
        compiler_params=_cparams(("parallel",)),
    )(x, sa["wqkv"], sa["bqkv"].reshape(1, 3 * D), sa["wo"], sa["bo"].reshape(1, D),
      src_mask, src_kpad, ln1["g"].reshape(1, D), ln1["b"].reshape(1, D),
      ff["w1"], ff["b1"].reshape(1, FF), ff["w2"], ff["b2"].reshape(1, D),
      ln2["g"].reshape(1, D), ln2["b"].reshape(1, D))


def decoder_layer(y, memory, lp, tgt_mask, tgt_kpad, mem_kpad, nhead):
    B, Tq, D = y.shape
    Tk = memory.shape[1]
    sa, ca, ff = lp["self_attn"], lp["cross_attn"], lp["ffn"]
    ln1, ln2, ln3 = lp["ln1"], lp["ln2"], lp["ln3"]
    FF = ff["w1"].shape[1]
    return pl.pallas_call(
        partial(_decoder_layer_kernel, nhead=nhead),
        grid=(B,),
        in_specs=[
            pl.BlockSpec((1, Tq, D), lambda b: (b, 0, 0)),     # y (decoder state)
            pl.BlockSpec((1, Tk, D), lambda b: (b, 0, 0)),     # memory
            pl.BlockSpec((D, 3 * D), lambda b: (0, 0)),        # wqkv
            pl.BlockSpec((1, 3 * D), lambda b: (0, 0)),        # bqkv
            pl.BlockSpec((D, D), lambda b: (0, 0)),            # wo (self)
            pl.BlockSpec((1, D), lambda b: (0, 0)),            # bo (self)
            pl.BlockSpec((Tq, Tq), lambda b: (0, 0)),          # tgt attn mask
            pl.BlockSpec((1, 1, Tq), lambda b: (b, 0, 0)),     # tgt key-pad bias
            pl.BlockSpec((1, D), lambda b: (0, 0)),            # ln1 gamma
            pl.BlockSpec((1, D), lambda b: (0, 0)),            # ln1 beta
            pl.BlockSpec((D, D), lambda b: (0, 0)),            # wq (cross)
            pl.BlockSpec((1, D), lambda b: (0, 0)),            # bq
            pl.BlockSpec((D, 2 * D), lambda b: (0, 0)),        # wkv (cross, fused K|V)
            pl.BlockSpec((1, 2 * D), lambda b: (0, 0)),        # bkv
            pl.BlockSpec((D, D), lambda b: (0, 0)),            # wo (cross)
            pl.BlockSpec((1, D), lambda b: (0, 0)),            # bo (cross)
            pl.BlockSpec((1, 1, Tk), lambda b: (b, 0, 0)),     # memory key-pad bias
            pl.BlockSpec((1, D), lambda b: (0, 0)),            # ln2 gamma
            pl.BlockSpec((1, D), lambda b: (0, 0)),            # ln2 beta
            pl.BlockSpec((D, FF), lambda b: (0, 0)),           # w1
            pl.BlockSpec((1, FF), lambda b: (0, 0)),           # b1
            pl.BlockSpec((FF, D), lambda b: (0, 0)),           # w2
            pl.BlockSpec((1, D), lambda b: (0, 0)),            # b2
            pl.BlockSpec((1, D), lambda b: (0, 0)),            # ln3 gamma
            pl.BlockSpec((1, D), lambda b: (0, 0)),            # ln3 beta
        ],
        out_specs=pl.BlockSpec((1, Tq, D), lambda b: (b, 0, 0)),
        out_shape=jax.ShapeDtypeStruct((B, Tq, D), jnp.float32),
        compiler_params=_cparams(("parallel",)),
    )(y, memory,
      sa["wqkv"], sa["bqkv"].reshape(1, 3 * D), sa["wo"], sa["bo"].reshape(1, D),
      tgt_mask, tgt_kpad, ln1["g"].reshape(1, D), ln1["b"].reshape(1, D),
      ca["wq"], ca["bq"].reshape(1, D), ca["wkv"], ca["bkv"].reshape(1, 2 * D),
      ca["wo"], ca["bo"].reshape(1, D),
      mem_kpad, ln2["g"].reshape(1, D), ln2["b"].reshape(1, D),
      ff["w1"], ff["b1"].reshape(1, FF), ff["w2"], ff["b2"].reshape(1, D),
      ln3["g"].reshape(1, D), ln3["b"].reshape(1, D))


def layernorm_pallas(x2d, gamma, beta):
    M, D = x2d.shape
    tm = _pick_tile(M)
    return pl.pallas_call(
        _ln_kernel,
        grid=(M // tm,),
        in_specs=[
            pl.BlockSpec((tm, D), lambda i: (i, 0)),
            pl.BlockSpec((1, D), lambda i: (0, 0)),
            pl.BlockSpec((1, D), lambda i: (0, 0)),
        ],
        out_specs=pl.BlockSpec((tm, D), lambda i: (i, 0)),
        out_shape=jax.ShapeDtypeStruct((M, D), jnp.float32),
        compiler_params=_cparams(("parallel",)),
    )(x2d, gamma.reshape(1, D), beta.reshape(1, D))


def layer_norm(x, p):
    B, T, D = x.shape
    return layernorm_pallas(x.reshape(B * T, D), p["g"], p["b"]).reshape(B, T, D)


def ln_generator(x2d, ln, w, b):
    """Fused final-decoder LayerNorm + generator projection, M/N-tiled over vocab."""
    M, K = x2d.shape
    N = w.shape[1]
    tm = _pick_tile(M)
    tn = _pick_tile(N)
    return pl.pallas_call(
        _ln_linear_kernel,
        grid=(M // tm, N // tn),
        in_specs=[
            pl.BlockSpec((tm, K), lambda i, j: (i, 0)),
            pl.BlockSpec((1, K), lambda i, j: (0, 0)),
            pl.BlockSpec((1, K), lambda i, j: (0, 0)),
            pl.BlockSpec((K, tn), lambda i, j: (0, j)),
            pl.BlockSpec((1, tn), lambda i, j: (0, j)),
        ],
        out_specs=pl.BlockSpec((tm, tn), lambda i, j: (i, j)),
        out_shape=jax.ShapeDtypeStruct((M, N), jnp.float32),
        compiler_params=_cparams(("parallel", "parallel")),
    )(x2d, ln["g"].reshape(1, K), ln["b"].reshape(1, K), w, b.reshape(1, N))


# ----------------------------------------------------------------------------
# Full forward (glue only; all heavy compute is inside the fused kernels)
# ----------------------------------------------------------------------------
def _kpad_bias(key_pad, B, Tk):
    """[B, Tk] bool padding mask -> [B, 1, Tk] additive fp32 bias (0 / NEG)."""
    if key_pad is None:
        return jnp.zeros((B, 1, Tk), jnp.float32)
    return jnp.where(key_pad, NEG, 0.0).astype(jnp.float32).reshape(B, 1, Tk)


def seq2seq_transformer_forward(params, cfg, src, trg, src_mask, tgt_mask,
                                src_padding_mask, tgt_padding_mask,
                                memory_key_padding_mask):
    D, H = cfg["emb_size"], cfg["nhead"]
    B, Ss = src.shape
    _, St = trg.shape
    pe = params["pos_embedding"]

    # token embedding * sqrt(d_model) + sinusoidal PE  (dropout == identity)
    src_emb = jnp.take(params["src_emb"], src, axis=0) * math.sqrt(D) + pe[:Ss][None]
    tgt_emb = jnp.take(params["tgt_emb"], trg, axis=0) * math.sqrt(D) + pe[:St][None]

    # tiny additive masks (no [B*H,Tq,Tk] materialization)
    src_mask_f = (jnp.zeros((Ss, Ss), jnp.float32) if src_mask is None
                  else src_mask.astype(jnp.float32))
    tgt_mask_f = (jnp.zeros((St, St), jnp.float32) if tgt_mask is None
                  else tgt_mask.astype(jnp.float32))
    src_kpad = _kpad_bias(src_padding_mask, B, Ss)
    tgt_kpad = _kpad_bias(tgt_padding_mask, B, St)
    mem_kpad = _kpad_bias(memory_key_padding_mask, B, Ss)

    # encoder (one fused kernel per layer)
    x = src_emb
    for lp in params["encoder_layers"]:
        x = encoder_layer(x, lp, src_mask_f, src_kpad, H)
    memory = layer_norm(x, params["encoder_norm"])

    # decoder (one fused kernel per layer)
    y = tgt_emb
    for lp in params["decoder_layers"]:
        y = decoder_layer(y, memory, lp, tgt_mask_f, tgt_kpad, mem_kpad, H)

    # final decoder LayerNorm fused with the generator projection
    logits = ln_generator(y.reshape(B * St, D), params["decoder_norm"],
                          params["gen_w"], params["gen_b"])
    return logits.reshape(B, St, cfg["tgt_vocab_size"])


# ----------------------------------------------------------------------------
# Deterministic parameter initialization (synthetic; mirrors module shapes)
# Matmul weights stored bf16 ([in, out] layout); biases / LN params fp32.
# ----------------------------------------------------------------------------
def init_params(key, cfg):
    D, FF = cfg["emb_size"], cfg["dim_feedforward"]
    keys = iter(jax.random.split(key, 1024))

    def nrm(shape, dtype=jnp.float32):
        return (jax.random.normal(next(keys), shape, jnp.float32) * 0.02).astype(dtype)

    def self_attn_p():
        return {"wqkv": nrm((D, 3 * D), jnp.bfloat16), "bqkv": nrm((3 * D,)),
                "wo": nrm((D, D), jnp.bfloat16), "bo": nrm((D,))}

    def cross_attn_p():
        return {"wq": nrm((D, D), jnp.bfloat16), "bq": nrm((D,)),
                "wkv": nrm((D, 2 * D), jnp.bfloat16), "bkv": nrm((2 * D,)),
                "wo": nrm((D, D), jnp.bfloat16), "bo": nrm((D,))}

    def ffn_p():
        return {"w1": nrm((D, FF), jnp.bfloat16), "b1": nrm((FF,)),
                "w2": nrm((FF, D), jnp.bfloat16), "b2": nrm((D,))}

    def ln_p():
        return {"g": jnp.ones((D,), jnp.float32), "b": jnp.zeros((D,), jnp.float32)}

    enc = [{"self_attn": self_attn_p(), "ffn": ffn_p(), "ln1": ln_p(), "ln2": ln_p()}
           for _ in range(cfg["num_encoder_layers"])]
    dec = [{"self_attn": self_attn_p(), "cross_attn": cross_attn_p(), "ffn": ffn_p(),
            "ln1": ln_p(), "ln2": ln_p(), "ln3": ln_p()}
           for _ in range(cfg["num_decoder_layers"])]

    # sinusoidal positional encoding (same formula as the PyTorch module)
    maxlen = cfg["max_seq_len"]
    den = jnp.exp(-jnp.arange(0, D, 2, dtype=jnp.float32) * math.log(10000.0) / D)
    pos = jnp.arange(maxlen, dtype=jnp.float32)[:, None]
    pe = jnp.zeros((maxlen, D), jnp.float32)
    pe = pe.at[:, 0::2].set(jnp.sin(pos * den))
    pe = pe.at[:, 1::2].set(jnp.cos(pos * den))

    return {
        "src_emb": nrm((cfg["src_vocab_size"], D)),
        "tgt_emb": nrm((cfg["tgt_vocab_size"], D)),
        "pos_embedding": pe,
        "encoder_layers": enc,
        "decoder_layers": dec,
        "encoder_norm": ln_p(),
        "decoder_norm": ln_p(),
        "gen_w": nrm((D, cfg["tgt_vocab_size"]), jnp.bfloat16),
        "gen_b": nrm((cfg["tgt_vocab_size"],)),
    }


# ----------------------------------------------------------------------------
if __name__ == "__main__":
    cfg = dict(num_encoder_layers=2, num_decoder_layers=2, emb_size=32, nhead=4,
               src_vocab_size=37, tgt_vocab_size=41, dim_feedforward=64,
               max_seq_len=64)

    key = jax.random.PRNGKey(0)
    pkey, skey, tkey = jax.random.split(key, 3)
    params = init_params(pkey, cfg)

    B, Ss, St = 2, 8, 8
    src = jax.random.randint(skey, (B, Ss), 0, cfg["src_vocab_size"], dtype=jnp.int32)
    trg = jax.random.randint(tkey, (B, St), 0, cfg["tgt_vocab_size"], dtype=jnp.int32)

    # masks follow the PyTorch convention: src_mask is all-zeros, tgt_mask is causal
    src_mask = jnp.zeros((Ss, Ss), jnp.float32)
    tgt_mask = jnp.where(jnp.triu(jnp.ones((St, St), bool), k=1), NEG, 0.0).astype(jnp.float32)
    src_padding_mask = jnp.zeros((B, Ss), bool).at[1, -2:].set(True)   # pad last 2 toks of seq 1
    tgt_padding_mask = jnp.zeros((B, St), bool)
    memory_key_padding_mask = src_padding_mask

    logits = seq2seq_transformer_forward(
        params, cfg, src, trg, src_mask, tgt_mask,
        src_padding_mask, tgt_padding_mask, memory_key_padding_mask)
    jax.block_until_ready(logits)

    assert logits.shape == (B, St, cfg["tgt_vocab_size"])
    assert bool(jnp.all(jnp.isfinite(logits)))
    print("KERNEL_OK")
</pallas_src>

<mosaic_0001>
module attributes {stable_mosaic.version = 11 : i64} {
  func.func @_encoder_layer_kernel(%arg0: i32, %arg1: memref<1x8x32xf32, #tpu.memory_space<vmem>>, %arg2: memref<32x96xbf16, #tpu.memory_space<vmem>>, %arg3: memref<1x96xf32, #tpu.memory_space<vmem>>, %arg4: memref<32x32xbf16, #tpu.memory_space<vmem>>, %arg5: memref<1x32xf32, #tpu.memory_space<vmem>>, %arg6: memref<8x8xf32, #tpu.memory_space<vmem>>, %arg7: memref<1x1x8xf32, #tpu.memory_space<vmem>>, %arg8: memref<1x32xf32, #tpu.memory_space<vmem>>, %arg9: memref<1x32xf32, #tpu.memory_space<vmem>>, %arg10: memref<32x64xbf16, #tpu.memory_space<vmem>>, %arg11: memref<1x64xf32, #tpu.memory_space<vmem>>, %arg12: memref<64x32xbf16, #tpu.memory_space<vmem>>, %arg13: memref<1x32xf32, #tpu.memory_space<vmem>>, %arg14: memref<1x32xf32, #tpu.memory_space<vmem>>, %arg15: memref<1x32xf32, #tpu.memory_space<vmem>>, %arg16: memref<1x8x32xf32, #tpu.memory_space<vmem>>) attributes {dimension_semantics = [#tpu.dimension_semantics<parallel>], iteration_bounds = array<i64: 2>, scalar_prefetch = 0 : i64, scratch_operands = 0 : i64, tpu.core_type = #tpu.core_type<tc>, window_params = [{transform_indices = @transform_0, window_bounds = array<i64: 1, 8, 32>}, {pipeline_mode = #tpu.pipeline_mode<synchronous>, transform_indices = @transform_1, window_bounds = array<i64: 32, 96>}, {pipeline_mode = #tpu.pipeline_mode<synchronous>, transform_indices = @transform_2, window_bounds = array<i64: 1, 96>}, {pipeline_mode = #tpu.pipeline_mode<synchronous>, transform_indices = @transform_3, window_bounds = array<i64: 32, 32>}, {pipeline_mode = #tpu.pipeline_mode<synchronous>, transform_indices = @transform_4, window_bounds = array<i64: 1, 32>}, {pipeline_mode = #tpu.pipeline_mode<synchronous>, transform_indices = @transform_5, window_bounds = array<i64: 8, 8>}, {transform_indices = @transform_6, window_bounds = array<i64: 1, 1, 8>}, {pipeline_mode = #tpu.pipeline_mode<synchronous>, transform_indices = @transform_7, window_bounds = array<i64: 1, 32>}, {pipeline_mode = #tpu.pipeline_mode<synchronous>, transform_indices = @transform_8, window_bounds = array<i64: 1, 32>}, {pipeline_mode = #tpu.pipeline_mode<synchronous>, transform_indices = @transform_9, window_bounds = array<i64: 32, 64>}, {pipeline_mode = #tpu.pipeline_mode<synchronous>, transform_indices = @transform_10, window_bounds = array<i64: 1, 64>}, {pipeline_mode = #tpu.pipeline_mode<synchronous>, transform_indices = @transform_11, window_bounds = array<i64: 64, 32>}, {pipeline_mode = #tpu.pipeline_mode<synchronous>, transform_indices = @transform_12, window_bounds = array<i64: 1, 32>}, {pipeline_mode = #tpu.pipeline_mode<synchronous>, transform_indices = @transform_13, window_bounds = array<i64: 1, 32>}, {pipeline_mode = #tpu.pipeline_mode<synchronous>, transform_indices = @transform_14, window_bounds = array<i64: 1, 32>}, {transform_indices = @transform_15, window_bounds = array<i64: 1, 8, 32>}]} {
    %c0 = arith.constant 0 : index
    %c0_0 = arith.constant 0 : index
    %c0_1 = arith.constant 0 : index
    %0 = vector.load %arg1[%c0, %c0_0, %c0_1] : memref<1x8x32xf32, #tpu.memory_space<vmem>>, vector<1x8x32xf32>
    %1 = vector.shape_cast %0 : vector<1x8x32xf32> to vector<8x32xf32>
    %2 = arith.truncf %1 : vector<8x32xf32> to vector<8x32xbf16>
    %c0_2 = arith.constant 0 : index
    %c0_3 = arith.constant 0 : index
    %3 = vector.load %arg2[%c0_2, %c0_3] : memref<32x96xbf16, #tpu.memory_space<vmem>>, vector<32x96xbf16>
    %cst = arith.constant dense<0.000000e+00> : vector<8x96xf32>
    %4 = tpu.matmul %2, %3, %cst {dimension_numbers = #tpu.dot_dimension_numbers<[1], [0], [0], [1], [0, 0, 1, 1], [], []>} : vector<8x32xbf16>, vector<32x96xbf16>, vector<8x96xf32> -> vector<8x96xf32>
    %c0_4 = arith.constant 0 : index
    %c0_5 = arith.constant 0 : index
    %5 = vector.load %arg3[%c0_4, %c0_5] : memref<1x96xf32, #tpu.memory_space<vmem>>, vector<1x96xf32>
    %6 = vector.broadcast %5 : vector<1x96xf32> to vector<8x96xf32>
    %7 = arith.addf %4, %6 : vector<8x96xf32>
    %c0_6 = arith.constant 0 : index
    %c0_7 = arith.constant 0 : index
    %8 = vector.load %arg6[%c0_6, %c0_7] : memref<8x8xf32, #tpu.memory_space<vmem>>, vector<8x8xf32>
    %c0_8 = arith.constant 0 : index
    %c0_9 = arith.constant 0 : index
    %c0_10 = arith.constant 0 : index
    %9 = vector.load %arg7[%c0_8, %c0_9, %c0_10] : memref<1x1x8xf32, #tpu.memory_space<vmem>>, vector<1x1x8xf32>
    %10 = vector.shape_cast %9 : vector<1x1x8xf32> to vector<1x8xf32>
    %11 = vector.broadcast %10 : vector<1x8xf32> to vector<8x8xf32>
    %12 = arith.addf %8, %11 : vector<8x8xf32>
    %13 = vector.extract_strided_slice %7 {offsets = [0, 0], sizes = [8, 32], strides = [1, 1]} : vector<8x96xf32> to vector<8x32xf32>
    %14 = vector.extract_strided_slice %7 {offsets = [0, 32], sizes = [8, 32], strides = [1, 1]} : vector<8x96xf32> to vector<8x32xf32>
    %15 = vector.extract_strided_slice %7 {offsets = [0, 64], sizes = [8, 32], strides = [1, 1]} : vector<8x96xf32> to vector<8x32xf32>
    %c0_11 = arith.constant 0 : index
    %c0_12 = arith.constant 0 : index
    %16 = vector.load %arg4[%c0_11, %c0_12] : memref<32x32xbf16, #tpu.memory_space<vmem>>, vector<32x32xbf16>
    %c0_13 = arith.constant 0 : index
    %c0_14 = arith.constant 0 : index
    %17 = vector.load %arg5[%c0_13, %c0_14] : memref<1x32xf32, #tpu.memory_space<vmem>>, vector<1x32xf32>
    %c0_15 = arith.constant 0 : index
    %c0_16 = arith.constant 0 : index
    %18 = vector.load %arg8[%c0_15, %c0_16] : memref<1x32xf32, #tpu.memory_space<vmem>>, vector<1x32xf32>
    %c0_17 = arith.constant 0 : index
    %c0_18 = arith.constant 0 : index
    %19 = vector.load %arg9[%c0_17, %c0_18] : memref<1x32xf32, #tpu.memory_space<vmem>>, vector<1x32xf32>
    %20 = vector.extract_strided_slice %13 {offsets = [0, 0], sizes = [8, 8], strides = [1, 1]} : vector<8x32xf32> to vector<8x8xf32>
    %cst_19 = arith.constant 0.353553385 : f32
    %21 = vector.broadcast %cst_19 : f32 to vector<8x8xf32>
    %22 = arith.mulf %20, %21 : vector<8x8xf32>
    %23 = arith.truncf %22 : vector<8x8xf32> to vector<8x8xbf16>
    %24 = vector.extract_strided_slice %14 {offsets = [0, 0], sizes = [8, 8], strides = [1, 1]} : vector<8x32xf32> to vector<8x8xf32>
    %25 = arith.truncf %24 : vector<8x8xf32> to vector<8x8xbf16>
    %26 = vector.extract_strided_slice %15 {offsets = [0, 0], sizes = [8, 8], strides = [1, 1]} : vector<8x32xf32> to vector<8x8xf32>
    %27 = arith.truncf %26 : vector<8x8xf32> to vector<8x8xbf16>
    %cst_20 = arith.constant dense<0.000000e+00> : vector<8x8xf32>
    %28 = tpu.matmul %23, %25, %cst_20 {dimension_numbers = #tpu.dot_dimension_numbers<[1], [1], [0], [0], [0, 0, 1, 0], [], []>} : vector<8x8xbf16>, vector<8x8xbf16>, vector<8x8xf32> -> vector<8x8xf32>
    %29 = arith.addf %28, %12 : vector<8x8xf32>
    %cst_21 = arith.constant dense<0xFF800000> : vector<8xf32>
    %30 = vector.multi_reduction <maximumf>, %29, %cst_21 [1] : vector<8x8xf32> to vector<8xf32>
    %31 = vector.shape_cast %30 : vector<8xf32> to vector<8x1xf32>
    %32 = vector.broadcast %31 : vector<8x1xf32> to vector<8x8xf32>
    %33 = arith.subf %29, %32 : vector<8x8xf32>
    %34 = math.exp %33 : vector<8x8xf32>
    %cst_22 = arith.constant dense<0.000000e+00> : vector<8xf32>
    %35 = vector.multi_reduction <add>, %34, %cst_22 [1] : vector<8x8xf32> to vector<8xf32>
    %36 = vector.shape_cast %35 : vector<8xf32> to vector<8x1xf32>
    %37 = arith.truncf %34 : vector<8x8xf32> to vector<8x8xbf16>
    %cst_23 = arith.constant dense<0.000000e+00> : vector<8x8xf32>
    %38 = tpu.matmul %37, %27, %cst_23 {dimension_numbers = #tpu.dot_dimension_numbers<[1], [0], [0], [1], [0, 0, 1, 1], [], []>} : vector<8x8xbf16>, vector<8x8xbf16>, vector<8x8xf32> -> vector<8x8xf32>
    %39 = tpu.reciprocal %36 {approx = true} : vector<8x1xf32> -> vector<8x1xf32>
    %40 = vector.broadcast %39 : vector<8x1xf32> to vector<8x8xf32>
    %41 = arith.mulf %38, %40 : vector<8x8xf32>
    %42 = vector.extract_strided_slice %13 {offsets = [0, 8], sizes = [8, 8], strides = [1, 1]} : vector<8x32xf32> to vector<8x8xf32>
    %cst_24 = arith.constant 0.353553385 : f32
    %43 = vector.broadcast %cst_24 : f32 to vector<8x8xf32>
    %44 = arith.mulf %42, %43 : vector<8x8xf32>
    %45 = arith.truncf %44 : vector<8x8xf32> to vector<8x8xbf16>
    %46 = vector.extract_strided_slice %14 {offsets = [0, 8], sizes = [8, 8], strides = [1, 1]} : vector<8x32xf32> to vector<8x8xf32>
    %47 = arith.truncf %46 : vector<8x8xf32> to vector<8x8xbf16>
    %48 = vector.extract_strided_slice %15 {offsets = [0, 8], sizes = [8, 8], strides = [1, 1]} : vector<8x32xf32> to vector<8x8xf32>
    %49 = arith.truncf %48 : vector<8x8xf32> to vector<8x8xbf16>
    %cst_25 = arith.constant dense<0.000000e+00> : vector<8x8xf32>
    %50 = tpu.matmul %45, %47, %cst_25 {dimension_numbers = #tpu.dot_dimension_numbers<[1], [1], [0], [0], [0, 0, 1, 0], [], []>} : vector<8x8xbf16>, vector<8x8xbf16>, vector<8x8xf32> -> vector<8x8xf32>
    %51 = arith.addf %50, %12 : vector<8x8xf32>
    %cst_26 = arith.constant dense<0xFF800000> : vector<8xf32>
    %52 = vector.multi_reduction <maximumf>, %51, %cst_26 [1] : vector<8x8xf32> to vector<8xf32>
    %53 = vector.shape_cast %52 : vector<8xf32> to vector<8x1xf32>
    %54 = vector.broadcast %53 : vector<8x1xf32> to vector<8x8xf32>
    %55 = arith.subf %51, %54 : vector<8x8xf32>
    %56 = math.exp %55 : vector<8x8xf32>
    %cst_27 = arith.constant dense<0.000000e+00> : vector<8xf32>
    %57 = vector.multi_reduction <add>, %56, %cst_27 [1] : vector<8x8xf32> to vector<8xf32>
    %58 = vector.shape_cast %57 : vector<8xf32> to vector<8x1xf32>
    %59 = arith.truncf %56 : vector<8x8xf32> to vector<8x8xbf16>
    %cst_28 = arith.constant dense<0.000000e+00> : vector<8x8xf32>
    %60 = tpu.matmul %59, %49, %cst_28 {dimension_numbers = #tpu.dot_dimension_numbers<[1], [0], [0], [1], [0, 0, 1, 1], [], []>} : vector<8x8xbf16>, vector<8x8xbf16>, vector<8x8xf32> -> vector<8x8xf32>
    %61 = tpu.reciprocal %58 {approx = true} : vector<8x1xf32> -> vector<8x1xf32>
    %62 = vector.broadcast %61 : vector<8x1xf32> to vector<8x8xf32>
    %63 = arith.mulf %60, %62 : vector<8x8xf32>
    %64 = vector.extract_strided_slice %13 {offsets = [0, 16], sizes = [8, 8], strides = [1, 1]} : vector<8x32xf32> to vector<8x8xf32>
    %cst_29 = arith.constant 0.353553385 : f32
    %65 = vector.broadcast %cst_29 : f32 to vector<8x8xf32>
    %66 = arith.mulf %64, %65 : vector<8x8xf32>
    %67 = arith.truncf %66 : vector<8x8xf32> to vector<8x8xbf16>
    %68 = vector.extract_strided_slice %14 {offsets = [0, 16], sizes = [8, 8], strides = [1, 1]} : vector<8x32xf32> to vector<8x8xf32>
    %69 = arith.truncf %68 : vector<8x8xf32> to vector<8x8xbf16>
    %70 = vector.extract_strided_slice %15 {offsets = [0, 16], sizes = [8, 8], strides = [1, 1]} : vector<8x32xf32> to vector<8x8xf32>
    %71 = arith.truncf %70 : vector<8x8xf32> to vector<8x8xbf16>
    %cst_30 = arith.constant dense<0.000000e+00> : vector<8x8xf32>
    %72 = tpu.matmul %67, %69, %cst_30 {dimension_numbers = #tpu.dot_dimension_numbers<[1], [1], [0], [0], [0, 0, 1, 0], [], []>} : vector<8x8xbf16>, vector<8x8xbf16>, vector<8x8xf32> -> vector<8x8xf32>
    %73 = arith.addf %72, %12 : vector<8x8xf32>
    %cst_31 = arith.constant dense<0xFF800000> : vector<8xf32>
    %74 = vector.multi_reduction <maximumf>, %73, %cst_31 [1] : vector<8x8xf32> to vector<8xf32>
    %75 = vector.shape_cast %74 : vector<8xf32> to vector<8x1xf32>
    %76 = vector.broadcast %75 : vector<8x1xf32> to vector<8x8xf32>
    %77 = arith.subf %73, %76 : vector<8x8xf32>
    %78 = math.exp %77 : vector<8x8xf32>
    %cst_32 = arith.constant dense<0.000000e+00> : vector<8xf32>
    %79 = vector.multi_reduction <add>, %78, %cst_32 [1] : vector<8x8xf32> to vector<8xf32>
    %80 = vector.shape_cast %79 : vector<8xf32> to vector<8x1xf32>
    %81 = arith.truncf %78 : vector<8x8xf32> to vector<8x8xbf16>
    %cst_33 = arith.constant dense<0.000000e+00> : vector<8x8xf32>
    %82 = tpu.matmul %81, %71, %cst_33 {dimension_numbers = #tpu.dot_dimension_numbers<[1], [0], [0], [1], [0, 0, 1, 1], [], []>} : vector<8x8xbf16>, vector<8x8xbf16>, vector<8x8xf32> -> vector<8x8xf32>
    %83 = tpu.reciprocal %80 {approx = true} : vector<8x1xf32> -> vector<8x1xf32>
    %84 = vector.broadcast %83 : vector<8x1xf32> to vector<8x8xf32>
    %85 = arith.mulf %82, %84 : vector<8x8xf32>
    %86 = vector.extract_strided_slice %13 {offsets = [0, 24], sizes = [8, 8], strides = [1, 1]} : vector<8x32xf32> to vector<8x8xf32>
    %cst_34 = arith.constant 0.353553385 : f32
    %87 = vector.broadcast %cst_34 : f32 to vector<8x8xf32>
    %88 = arith.mulf %86, %87 : vector<8x8xf32>
    %89 = arith.truncf %88 : vector<8x8xf32> to vector<8x8xbf16>
    %90 = vector.extract_strided_slice %14 {offsets = [0, 24], sizes = [8, 8], strides = [1, 1]} : vector<8x32xf32> to vector<8x8xf32>
    %91 = arith.truncf %90 : vector<8x8xf32> to vector<8x8xbf16>
    %92 = vector.extract_strided_slice %15 {offsets = [0, 24], sizes = [8, 8], strides = [1, 1]} : vector<8x32xf32> to vector<8x8xf32>
    %93 = arith.truncf %92 : vector<8x8xf32> to vector<8x8xbf16>
    %cst_35 = arith.constant dense<0.000000e+00> : vector<8x8xf32>
    %94 = tpu.matmul %89, %91, %cst_35 {dimension_numbers = #tpu.dot_dimension_numbers<[1], [1], [0], [0], [0, 0, 1, 0], [], []>} : vector<8x8xbf16>, vector<8x8xbf16>, vector<8x8xf32> -> vector<8x8xf32>
    %95 = arith.addf %94, %12 : vector<8x8xf32>
    %cst_36 = arith.constant dense<0xFF800000> : vector<8xf32>
    %96 = vector.multi_reduction <maximumf>, %95, %cst_36 [1] : vector<8x8xf32> to vector<8xf32>
    %97 = vector.shape_cast %96 : vector<8xf32> to vector<8x1xf32>
    %98 = vector.broadcast %97 : vector<8x1xf32> to vector<8x8xf32>
    %99 = arith.subf %95, %98 : vector<8x8xf32>
    %100 = math.exp %99 : vector<8x8xf32>
    %cst_37 = arith.constant dense<0.000000e+00> : vector<8xf32>
    %101 = vector.multi_reduction <add>, %100, %cst_37 [1] : vector<8x8xf32> to vector<8xf32>
    %102 = vector.shape_cast %101 : vector<8xf32> to vector<8x1xf32>
    %103 = arith.truncf %100 : vector<8x8xf32> to vector<8x8xbf16>
    %cst_38 = arith.constant dense<0.000000e+00> : vector<8x8xf32>
    %104 = tpu.matmul %103, %93, %cst_38 {dimension_numbers = #tpu.dot_dimension_numbers<[1], [0], [0], [1], [0, 0, 1, 1], [], []>} : vector<8x8xbf16>, vector<8x8xbf16>, vector<8x8xf32> -> vector<8x8xf32>
    %105 = tpu.reciprocal %102 {approx = true} : vector<8x1xf32> -> vector<8x1xf32>
    %106 = vector.broadcast %105 : vector<8x1xf32> to vector<8x8xf32>
    %107 = arith.mulf %104, %106 : vector<8x8xf32>
    %108 = tpu.concatenate %41, %63, %85, %107 in 1 : vector<8x8xf32>, vector<8x8xf32>, vector<8x8xf32>, vector<8x8xf32> -> vector<8x32xf32>
    %109 = arith.truncf %108 : vector<8x32xf32> to vector<8x32xbf16>
    %cst_39 = arith.constant dense<0.000000e+00> : vector<8x32xf32>
    %110 = tpu.matmul %109, %16, %cst_39 {dimension_numbers = #tpu.dot_dimension_numbers<[1], [0], [0], [1], [0, 0, 1, 1], [], []>} : vector<8x32xbf16>, vector<32x32xbf16>, vector<8x32xf32> -> vector<8x32xf32>
    %111 = vector.broadcast %17 : vector<1x32xf32> to vector<8x32xf32>
    %112 = arith.addf %110, %111 : vector<8x32xf32>
    %113 = arith.addf %1, %112 : vector<8x32xf32>
    %cst_40 = arith.constant dense<0.000000e+00> : vector<8xf32>
    %114 = vector.multi_reduction <add>, %113, %cst_40 [1] : vector<8x32xf32> to vector<8xf32>
    %115 = vector.shape_cast %114 : vector<8xf32> to vector<8x1xf32>
    %cst_41 = arith.constant 3.200000e+01 : f32
    %116 = vector.broadcast %cst_41 : f32 to vector<8x1xf32>
    %117 = arith.divf %115, %116 : vector<8x1xf32>
    %118 = vector.broadcast %117 : vector<8x1xf32> to vector<8x32xf32>
    %119 = arith.subf %113, %118 : vector<8x32xf32>
    %120 = arith.mulf %119, %119 : vector<8x32xf32>
    %cst_42 = arith.constant dense<0.000000e+00> : vector<8xf32>
    %121 = vector.multi_reduction <add>, %120, %cst_42 [1] : vector<8x32xf32> to vector<8xf32>
    %122 = vector.shape_cast %121 : vector<8xf32> to vector<8x1xf32>
    %cst_43 = arith.constant 3.200000e+01 : f32
    %123 = vector.broadcast %cst_43 : f32 to vector<8x1xf32>
    %124 = arith.divf %122, %123 : vector<8x1xf32>
    %125 = vector.broadcast %117 : vector<8x1xf32> to vector<8x32xf32>
    %126 = arith.subf %113, %125 : vector<8x32xf32>
    %cst_44 = arith.constant 9.99999974E-6 : f32
    %127 = vector.broadcast %cst_44 : f32 to vector<8x1xf32>
    %128 = arith.addf %124, %127 : vector<8x1xf32>
    %129 = math.rsqrt %128 : vector<8x1xf32>
    %130 = vector.broadcast %129 : vector<8x1xf32> to vector<8x32xf32>
    %131 = arith.mulf %126, %130 : vector<8x32xf32>
    %132 = vector.broadcast %18 : vector<1x32xf32> to vector<8x32xf32>
    %133 = arith.mulf %131, %132 : vector<8x32xf32>
    %134 = vector.broadcast %19 : vector<1x32xf32> to vector<8x32xf32>
    %135 = arith.addf %133, %134 : vector<8x32xf32>
    %c0_45 = arith.constant 0 : index
    %c0_46 = arith.constant 0 : index
    %136 = vector.load %arg10[%c0_45, %c0_46] : memref<32x64xbf16, #tpu.memory_space<vmem>>, vector<32x64xbf16>
    %c0_47 = arith.constant 0 : index
    %c0_48 = arith.constant 0 : index
    %137 = vector.load %arg11[%c0_47, %c0_48] : memref<1x64xf32, #tpu.memory_space<vmem>>, vector<1x64xf32>
    %c0_49 = arith.constant 0 : index
    %c0_50 = arith.constant 0 : index
    %138 = vector.load %arg12[%c0_49, %c0_50] : memref<64x32xbf16, #tpu.memory_space<vmem>>, vector<64x32xbf16>
    %c0_51 = arith.constant 0 : index
    %c0_52 = arith.constant 0 : index
    %139 = vector.load %arg13[%c0_51, %c0_52] : memref<1x32xf32, #tpu.memory_space<vmem>>, vector<1x32xf32>
    %c0_53 = arith.constant 0 : index
    %c0_54 = arith.constant 0 : index
    %140 = vector.load %arg14[%c0_53, %c0_54] : memref<1x32xf32, #tpu.memory_space<vmem>>, vector<1x32xf32>
    %c0_55 = arith.constant 0 : index
    %c0_56 = arith.constant 0 : index
    %141 = vector.load %arg15[%c0_55, %c0_56] : memref<1x32xf32, #tpu.memory_space<vmem>>, vector<1x32xf32>
    %142 = arith.truncf %135 : vector<8x32xf32> to vector<8x32xbf16>
    %cst_57 = arith.constant dense<0.000000e+00> : vector<8x64xf32>
    %143 = tpu.matmul %142, %136, %cst_57 {dimension_numbers = #tpu.dot_dimension_numbers<[1], [0], [0], [1], [0, 0, 1, 1], [], []>} : vector<8x32xbf16>, vector<32x64xbf16>, vector<8x64xf32> -> vector<8x64xf32>
    %144 = vector.broadcast %137 : vector<1x64xf32> to vector<8x64xf32>
    %145 = arith.addf %143, %144 : vector<8x64xf32>
    %cst_58 = arith.constant 0.000000e+00 : f32
    %146 = vector.broadcast %cst_58 : f32 to vector<8x64xf32>
    %147 = arith.maximumf %145, %146 : vector<8x64xf32>
    %148 = arith.truncf %147 : vector<8x64xf32> to vector<8x64xbf16>
    %cst_59 = arith.constant dense<0.000000e+00> : vector<8x32xf32>
    %149 = tpu.matmul %148, %138, %cst_59 {dimension_numbers = #tpu.dot_dimension_numbers<[1], [0], [0], [1], [0, 0, 1, 1], [], []>} : vector<8x64xbf16>, vector<64x32xbf16>, vector<8x32xf32> -> vector<8x32xf32>
    %150 = vector.broadcast %139 : vector<1x32xf32> to vector<8x32xf32>
    %151 = arith.addf %149, %150 : vector<8x32xf32>
    %152 = arith.addf %135, %151 : vector<8x32xf32>
    %cst_60 = arith.constant dense<0.000000e+00> : vector<8xf32>
    %153 = vector.multi_reduction <add>, %152, %cst_60 [1] : vector<8x32xf32> to vector<8xf32>
    %154 = vector.shape_cast %153 : vector<8xf32> to vector<8x1xf32>
    %cst_61 = arith.constant 3.200000e+01 : f32
    %155 = vector.broadcast %cst_61 : f32 to vector<8x1xf32>
    %156 = arith.divf %154, %155 : vector<8x1xf32>
    %157 = vector.broadcast %156 : vector<8x1xf32> to vector<8x32xf32>
    %158 = arith.subf %152, %157 : vector<8x32xf32>
    %159 = arith.mulf %158, %158 : vector<8x32xf32>
    %cst_62 = arith.constant dense<0.000000e+00> : vector<8xf32>
    %160 = vector.multi_reduction <add>, %159, %cst_62 [1] : vector<8x32xf32> to vector<8xf32>
    %161 = vector.shape_cast %160 : vector<8xf32> to vector<8x1xf32>
    %cst_63 = arith.constant 3.200000e+01 : f32
    %162 = vector.broadcast %cst_63 : f32 to vector<8x1xf32>
    %163 = arith.divf %161, %162 : vector<8x1xf32>
    %164 = vector.broadcast %156 : vector<8x1xf32> to vector<8x32xf32>
    %165 = arith.subf %152, %164 : vector<8x32xf32>
    %cst_64 = arith.constant 9.99999974E-6 : f32
    %166 = vector.broadcast %cst_64 : f32 to vector<8x1xf32>
    %167 = arith.addf %163, %166 : vector<8x1xf32>
    %168 = math.rsqrt %167 : vector<8x1xf32>
    %169 = vector.broadcast %168 : vector<8x1xf32> to vector<8x32xf32>
    %170 = arith.mulf %165, %169 : vector<8x32xf32>
    %171 = vector.broadcast %140 : vector<1x32xf32> to vector<8x32xf32>
    %172 = arith.mulf %170, %171 : vector<8x32xf32>
    %173 = vector.broadcast %141 : vector<1x32xf32> to vector<8x32xf32>
    %174 = arith.addf %172, %173 : vector<8x32xf32>
    %c0_65 = arith.constant 0 : index
    %c0_66 = arith.constant 0 : index
    %c0_67 = arith.constant 0 : index
    %175 = vector.load %arg16[%c0_65, %c0_66, %c0_67] : memref<1x8x32xf32, #tpu.memory_space<vmem>>, vector<1x8x32xf32>
    %176 = vector.shape_cast %175 : vector<1x8x32xf32> to vector<8x32xf32>
    %177 = vector.shape_cast %174 : vector<8x32xf32> to vector<1x8x32xf32>
    tpu.vector_store %arg16[%c0_65, %c0_66, %c0_67], %177 {strides = array<i32>} : memref<1x8x32xf32, #tpu.memory_space<vmem>>, vector<1x8x32xf32>,
    return
  }
  func.func @transform_0(%arg0: i32) -> (i32, i32, i32) {
    %c0_i32 = arith.constant 0 : i32
    %c0_i32_0 = arith.constant 0 : i32
    %c0_i32_1 = arith.constant 0 : i32
    return %arg0, %c0_i32, %c0_i32_0 : i32, i32, i32
  }
  func.func @transform_1(%arg0: i32) -> (i32, i32) {
    %c0_i32 = arith.constant 0 : i32
    %c0_i32_0 = arith.constant 0 : i32
    %c0_i32_1 = arith.constant 0 : i32
    return %c0_i32, %c0_i32_0 : i32, i32
  }
  func.func @transform_2(%arg0: i32) -> (i32, i32) {
    %c0_i32 = arith.constant 0 : i32
    %c0_i32_0 = arith.constant 0 : i32
    %c0_i32_1 = arith.constant 0 : i32
    return %c0_i32, %c0_i32_0 : i32, i32
  }
  func.func @transform_3(%arg0: i32) -> (i32, i32) {
    %c0_i32 = arith.constant 0 : i32
    %c0_i32_0 = arith.constant 0 : i32
    %c0_i32_1 = arith.constant 0 : i32
    return %c0_i32, %c0_i32_0 : i32, i32
  }
  func.func @transform_4(%arg0: i32) -> (i32, i32) {
    %c0_i32 = arith.constant 0 : i32
    %c0_i32_0 = arith.constant 0 : i32
    %c0_i32_1 = arith.constant 0 : i32
    return %c0_i32, %c0_i32_0 : i32, i32
  }
  func.func @transform_5(%arg0: i32) -> (i32, i32) {
    %c0_i32 = arith.constant 0 : i32
    %c0_i32_0 = arith.constant 0 : i32
    %c0_i32_1 = arith.constant 0 : i32
    return %c0_i32, %c0_i32_0 : i32, i32
  }
  func.func @transform_6(%arg0: i32) -> (i32, i32, i32) {
    %c0_i32 = arith.constant 0 : i32
    %c0_i32_0 = arith.constant 0 : i32
    %c0_i32_1 = arith.constant 0 : i32
    return %arg0, %c0_i32, %c0_i32_0 : i32, i32, i32
  }
  func.func @transform_7(%arg0: i32) -> (i32, i32) {
    %c0_i32 = arith.constant 0 : i32
    %c0_i32_0 = arith.constant 0 : i32
    %c0_i32_1 = arith.constant 0 : i32
    return %c0_i32, %c0_i32_0 : i32, i32
  }
  func.func @transform_8(%arg0: i32) -> (i32, i32) {
    %c0_i32 = arith.constant 0 : i32
    %c0_i32_0 = arith.constant 0 : i32
    %c0_i32_1 = arith.constant 0 : i32
    return %c0_i32, %c0_i32_0 : i32, i32
  }
  func.func @transform_9(%arg0: i32) -> (i32, i32) {
    %c0_i32 = arith.constant 0 : i32
    %c0_i32_0 = arith.constant 0 : i32
    %c0_i32_1 = arith.constant 0 : i32
    return %c0_i32, %c0_i32_0 : i32, i32
  }
  func.func @transform_10(%arg0: i32) -> (i32, i32) {
    %c0_i32 = arith.constant 0 : i32
    %c0_i32_0 = arith.constant 0 : i32
    %c0_i32_1 = arith.constant 0 : i32
    return %c0_i32, %c0_i32_0 : i32, i32
  }
  func.func @transform_11(%arg0: i32) -> (i32, i32) {
    %c0_i32 = arith.constant 0 : i32
    %c0_i32_0 = arith.constant 0 : i32
    %c0_i32_1 = arith.constant 0 : i32
    return %c0_i32, %c0_i32_0 : i32, i32
  }
  func.func @transform_12(%arg0: i32) -> (i32, i32) {
    %c0_i32 = arith.constant 0 : i32
    %c0_i32_0 = arith.constant 0 : i32
    %c0_i32_1 = arith.constant 0 : i32
    return %c0_i32, %c0_i32_0 : i32, i32
  }
  func.func @transform_13(%arg0: i32) -> (i32, i32) {
    %c0_i32 = arith.constant 0 : i32
    %c0_i32_0 = arith.constant 0 : i32
    %c0_i32_1 = arith.constant 0 : i32
    return %c0_i32, %c0_i32_0 : i32, i32
  }
  func.func @transform_14(%arg0: i32) -> (i32, i32) {
    %c0_i32 = arith.constant 0 : i32
    %c0_i32_0 = arith.constant 0 : i32
    %c0_i32_1 = arith.constant 0 : i32
    return %c0_i32, %c0_i32_0 : i32, i32
  }
  func.func @transform_15(%arg0: i32) -> (i32, i32, i32) {
    %c0_i32 = arith.constant 0 : i32
    %c0_i32_0 = arith.constant 0 : i32
    %c0_i32_1 = arith.constant 0 : i32
    return %arg0, %c0_i32, %c0_i32_0 : i32, i32, i32
  }
}

</mosaic_0001>

<bundles_post_ra>
// kernel: tpu_custom_call.1
= control target key start
LH: loop header
LB: loop body
LE: loop exit
PB: predicated region body
PF: predicated region fallthrough
CT: control target
= control target key end

     0   :  { %s1846_s0 = inlined_call_operand.vmem [shape: f32[2,8,32], index: 0, kind: input, shape index: {}]   ;;  %s1847_s1 = inlined_call_operand.vmem [shape: bf16[32,96], index: 1, kind: input, shape index: {}]   ;;  %s1848_s2 = inlined_call_operand.hbm [shape: f32[1,96], index: 2, kind: input, shape index: {}]   ;;  %s1849_s3 = inlined_call_operand.vmem [shape: bf16[32,32], index: 3, kind: input, shape index: {}]   ;;  %s1850_s4 = inlined_call_operand.vmem [shape: f32[1,32], index: 4, kind: input, shape index: {}]   ;;  %s1851_s5 = inlined_call_operand.hbm [shape: f32[8,8], index: 5, kind: input, shape index: {}]   ;;  %s1852_s6 = inlined_call_operand.vmem [shape: f32[2,1,8], index: 6, kind: input, shape index: {}]   ;;  %s1853_s7 = inlined_call_operand.vmem [shape: f32[1,32], index: 7, kind: input, shape index: {}]   ;;  %s1854_s8 = inlined_call_operand.vmem [shape: f32[1,32], index: 8, kind: input, shape index: {}]   ;;  %s1855_s9 = inlined_call_operand.hbm [shape: bf16[32,64], index: 9, kind: input, shape index: {}]   ;;  %s1856_s10 = inlined_call_operand.vmem [shape: f32[1,64], index: 10, kind: input, shape index: {}]   ;;  %s1857_s11 = inlined_call_operand.vmem [shape: bf16[64,32], index: 11, kind: input, shape index: {}]   ;;  %s1858_s12 = inlined_call_operand.vmem [shape: f32[1,32], index: 12, kind: input, shape index: {}]   ;;  %s1859_s13 = inlined_call_operand.vmem [shape: f32[1,32], index: 13, kind: input, shape index: {}]   ;;  %s1860_s14 = inlined_call_operand.vmem [shape: f32[1,32], index: 14, kind: input, shape index: {}]   ;;  %s1861_s15 = inlined_call_operand.hbm [shape: f32[2,8,32], index: 15, kind: output, shape index: {}]  }
   0x1   :  { %1868 = sst [smem:[#allocation18_spill]] %s1848_s2 }
   0x2   :  { %1869 = sst [smem:[#allocation19_spill]] %s1851_s5 }
   0x3   :  { %20 = vsyncpa [#allocation3], 0 }
   0x4   :  { %21 = vsyncpa [#allocation6], 0 }
   0x5   :  { %22 = vsyncpa [#allocation4], 0 }
   0x6   :  { %24 = vsyncpa [#allocation4 + $0x1], 0  ;;  %s1618_s18 = smov 0   ;;  %s1620_s19 = smov 0  }
   0x7   :  { %s1622_s20 = smov 0   ;;  %s1624_s21 = smov 0  }
   0x8 LB: > { %1870 = sst [smem:[#allocation12_spill]] %s1504_s18  ;;  %s1639_s22 = sadd.s32 4294967295, %s1516_s21   ;;  %s1516_s21 = sphi %s1624_s21, %s1885_s21   ;;  %s1512_s20 = sphi %s1622_s20, %s1887_s20   ;;  %s1508_s19 = sphi %s1620_s19, %s1889_s19   ;;  %s1504_s18 = sphi %s1618_s18, %s1888_s18  }
   0x9   : > { %1871 = sst [smem:[#allocation13_spill]] %s1512_s20  ;;  %s1160_s23 = sadd.s32 4294967294, %s1516_s21  }
   0xa   : > { %1872 = sst [smem:[#allocation14_spill]] %s1516_s21  ;;  %s1643_s24 = sadd.s32 1, %s1516_s21  }
   0xb   : > { %1873 = sst [smem:[#allocation15_spill]] %s1643_s24  ;;  %s362_s25 = sadd.s32 1, %s1512_s20 }
   0xc   : > { %s359_s26 = ssub.s32 %s1516_s21, %s1643_s24  ;;  %p372_p0 = scmp.ne.s32.totalorder %s1512_s20, %s1508_s19 }
   0xd   : > { %p360_p1 = scmp.eq.s32.totalorder %s359_s26, 0  ;;  %p373_p2 = scmp.eq.s32.totalorder %s1639_s22, 1 }
   0xe   : > { %p378_p3 = scmp.ne.s32.totalorder %s1508_s19, %s1504_s18  ;;  %p379_p4 = scmp.eq.s32.totalorder %s1160_s23, 1 }
   0xf   : > { %s1654_s27 = scalar_select %p360_p1, %s1512_s20, %s362_s25  }
  0x10   : > { %p1656_p5 = por %p373_p2, %p372_p0  ;;  %p1660_p6 = por %p379_p4, %p378_p3 }
  0x11   : > { %1874 = sst [smem:[#allocation16_spill]] %s1654_s27  ;;  %p1161_p7 = scmp.ge.s32.totalorder %s1516_s21, 1 }
  0x12   : > { %s1876_s29 = scalar_select %p1660_p6, 1, 0 }
  0x13   : > { %p386_p8 = scmp.lt.s32.totalorder %s1516_s21, 3  ;;  %p1266_p9 = scmp.eq.s32.totalorder %s1639_s22, 0 }
  0x14   : > { %1877 = sst [smem:[#allocation17_spill]] %s1876_s29  ;;  %s1518_s25 = smov [#allocation5]  }
  0x15   : > { %p1667_p10 = pnand %p1161_p7, %p386_p8  ;;  %s1879_s5 = sld [smem:[#allocation19_spill]] }
  0x16   : > { %s421_s26 = sshll.u32 %s1518_s25, 4  ;;  %s1880_s2 = sld [smem:[#allocation18_spill]]  ;;  %s422_s26 = int_to_ptr.vmem [resolvable:$true] %s421_s26 }
  0x17   : > { %p1252_p11 = pneg %p1667_p10  ;;  %s1519_s18 = smov [#allocation2]  }
  0x18   : > { %s403_s25 = sshll.u32 %s1519_s18, 4  ;;  %s1520_s20 = smov [#allocation7]   ;;  %s404_s25 = int_to_ptr.vmem [resolvable:$true] %s403_s25 }
  0x19   : > { %p1681_p12 = pnand %p1266_p9, %p1252_p11  ;;  %s438_s27 = sshll.u32 %s1520_s20, 4  ;;  %s439_s27 = int_to_ptr.vmem [resolvable:$true] %s438_s27 }
  0x1a   : > { %s1522_s21 = smov 4  }
  0x1b   : > { %s419_s23 = sshll.u32 %s1879_s5, 4  ;;  %s436_s5 = sshll.u32 %s1855_s9, 4  ;;  %s420_s23 = int_to_ptr.hbm [resolvable:$true] %s419_s23  ;;  %s437_s5 = int_to_ptr.hbm [resolvable:$true] %s436_s5 }
  0x1c   : > { %s401_s24 = sshll.u32 %s1880_s2, 4  ;;  %s1521_s2 = smov 64   ;;  %s402_s24 = int_to_ptr.hbm [resolvable:$true] %s401_s24 }
  0x1d   : > { %1258 = dma.hbm_to_vmem [thread:$0]  (!%p1681_p12), %s420_s23, 128, %s422_s26, [#allocation6]  }
  0x1e   : > { %1255 = dma.hbm_to_vmem [thread:$0]  (!%p1681_p12), %s402_s24, 16, %s404_s25, [#allocation3]  }
  0x1f   : > { %1261 = dma.hbm_to_vmem [thread:$0]  (!%p1681_p12), %s437_s5, 256, %s439_s27, [#allocation6], %s1521_s2, %s1521_s2, %s1522_s21  }
  0x20   : > { %482 = sbr.rel (%p1667_p10) target bundleno = 1783 (0x6f7), region = 80 }
  0x25   : > { %1491 = dma.done.wait (%p1266_p9), [#allocation3], 16  }
  0x26   : > { %1493 = vsyncadd (%p1266_p9), [#allocation3], 4294967280 }
  0x27   : > { %1495 = dma.done.wait (%p1266_p9), [#allocation6], 384  }
  0x28   : > { %1497 = vsyncadd (%p1266_p9), [#allocation6], 4294966912  ;;  %p543_p13 = scmp.lt.s32.totalorder %s1639_s22, 1  ;;  %v1229_v0 = vld [vmem:[%s1847_s1 + $0x8] sm:$0xff]  ;;  %v1228_v1 = vld [vmem:[%s1847_s1] sm:$0xff]  ;;  %vm573_vm0 = vcmask 261120  }
  0x29   : > { %583 = vmatpush.bf16.msra.mxu0 %v1229_v0  ;;  %v1325_v4 = vld [vmem:[#allocation2] ss:$0 sm:$0xff]  ;;  %s1523_s20 = smov 96   ;;  %s1524_s27 = smov 104   ;;  %vm609_vm1 = vcmask 64512   ;;  %vm644_vm2 = vcmask 1043456  }
  0x2a   : > { %s1706_s18 = scalar_select %p543_p13, %s1639_s22, 1  ;;  %v590_v27 = vld [vmem:[#allocation5] sm:$0xff]  ;;  %vm845_vm3 = vcmask 130048   ;;  %vm847_vm4 = vcmask 195584   ;;  %vm996_vm9 = vcmask 523264  }
  0x2b   : > { %s1526_s5 = smov 88   ;;  %s1527_s21 = smov 80  }
  0x2c   : > { %s1171_s2 = sshll.u32 %s1706_s18, 3  ;;  %s549_s25 = scalar_lea.vmem %s1852_s6, %s1706_s18 }
  0x2d   : > { %s546_s24 = scalar_lea.vmem %s1846_s0, %s1171_s2  ;;  %584 = vmatpush.bf16.msra.mxu0 %v1228_v1  ;;  %s1525_s2 = smov 120   ;;  %v1326_v26 = vld [vmem:[%s549_s25] ss:$0 sm:$0xff] }
  0x2e   : > { %v1722_v2 = vld [vmem:[%s546_s24] sm:$0xff]  ;;  %s1528_s24 = smov 72   ;;  %s1529_s29 = smov 112   ;;  %v595_v28 = vadd.f32 %v1326_v26, %v590_v27  ;;  %v1231_v27 = vld [vmem:[%s1849_s3 + $0x8] sm:$0xff] }
  0x2f   : > { %v552_v3 = vpack.c.bf16 %v1722_v2, %v1722_v2  ;;  %s1530_s30 = smov 64   ;;  %s1531_s23 = smov 56  }
  0x30   : > { %s1532_s18 = smov 48   ;;  %s1533_s17 = smov 40  }
  0x31   : > { %1180 = vmatmul.msk.bf16.vlgmr.msra.gmra.mxu0 %vm573_vm0, %v552_v3  ;;  %s1534_s25 = smov 8   ;;  %s540_s16 = sand.u32 1, %s1508_s19  }
  0xae   : > { %v586_v5 = vpop.f32.mrf.mxu0 }
  0xaf   : > { %v587_v6 = vadd.f32 %v1325_v4, %v586_v5 }
  0xb1   : > { %v603_v7 = vmul.f32 0.35355338, %v587_v6  ;;  %v1727_v8 = vpack.c.bf16 %v587_v6, %v587_v6 }
  0xb3   : > { %v604_v9 = vpack.c.bf16 %v603_v7, %v603_v7  ;;  %607 = vrot.lane.b32.xlu0 %v1727_v8, %s1523_s20  ;;  %s1535_s20 = smov 16  }
  0xb5   : > { %776 = vrot.lane.b32.xlu2 %v604_v9, %s1524_s27  ;;  %664 = vrot.lane.b32.xlu1 %v604_v9, %s1525_s2  ;;  %s1536_s27 = smov 24  }
  0xb6   : > { %v588_v10 = vpop.f32.mrf.mxu0 }
  0xbb   : > { %666 = vrot.lane.b32.xlu0 %v1727_v8, %s1526_s5 }
  0xbd   : > { %722 = vrot.lane.b32.xlu2 %v1727_v8, %s1527_s21  ;;  %778 = vrot.lane.b32.xlu1 %v1727_v8, %s1528_s24 }
  0xc3   : > { %720 = vrot.lane.b32.xlu0 %v604_v9, %s1529_s29 }
  0xc5   : > { %639 = vrot.lane.b32.xlu2 %v1727_v8, %s1530_s30 }
  0xcd   : > { %697 = vrot.lane.b32.xlu2 %v1727_v8, %s1531_s23  ;;  %s1046_s23 = scalar_lea.sflag [#allocation4], %s540_s16 }
 0x10f   : > { %v777_v11 = vpop.permute.xlu2 %776 }
 0x117   : > { %v723_v12 = vpop.permute.xlu2 %722 }
 0x118   : > { %v728_v13 = vsel %vm609_vm1, %v723_v12, 0 }
 0x119   : > { %737 = vmatpush.bf16.xpose.msrb.mxu0 %v728_v13 }
 0x11f   : > { %v640_v14 = vpop.permute.xlu2 %639 }
 0x120   : > { %v646_v15 = vsel %vm644_vm2, %v640_v14, 0 }
 0x121   : > { %655 = vmatpush.bf16.msra.mxu2 %v646_v15  ;;  %874 = vmatpush.bf16.msra.mxu0 %v1231_v27 }
 0x125   : > { %v608_v16 = vpop.permute.xlu0 %607 }
 0x126   : > { %v614_v17 = vsel %vm609_vm1, %v608_v16, 0 }
 0x127   : > { %623 = vmatpush.bf16.xpose.msra.mxu1 %v614_v17  ;;  %v698_v18 = vpop.permute.xlu2 %697  ;;  %v665_v19 = vpop.permute.xlu1 %664 }
 0x128   : > { %v703_v20 = vsel %vm644_vm2, %v698_v18, 0 }
 0x129   : > { %712 = vmatpush.bf16.msrb.mxu2 %v703_v20 }
 0x12d   : > { %v667_v21 = vpop.permute.xlu0 %666 }
 0x12e   : > { %1181 = vmatmul.msk.bf16.vlgmr.msra.gmra.mxu1 %vm609_vm1, %v604_v9  ;;  %v672_v22 = vsel %vm609_vm1, %v667_v21, 0 }
 0x12f   : > { %681 = vmatpush.bf16.xpose.msra.mxu3 %v672_v22  ;;  %v779_v23 = vpop.permute.xlu1 %778 }
 0x130   : > { %v784_v24 = vsel %vm609_vm1, %v779_v23, 0 }
 0x135   : > { %v721_v25 = vpop.permute.xlu0 %720 }
 0x136   : > { %1183 = vmatmul.msk.bf16.vlgmr.msra.gmra.mxu3 %vm609_vm1, %v665_v19  ;;  %1185 = vmatmul.msk.bf16.vlgmr.msrb.gmra.mxu0 %vm609_vm1, %v721_v25 }
 0x137   : > { %793 = vmatpush.bf16.xpose.msrb.mxu3 %v784_v24 }
 0x146   : > { %1187 = vmatmul.msk.bf16.vlgmr.msrb.gmra.mxu3 %vm609_vm1, %v777_v11 }
 0x1ab   : > { %v625_v29 = vpop.f32.mrf.mxu1 }
 0x1ac   : > { %v626_v30 = vadd.f32 %v625_v29, %v595_v28 }
 0x1ae   : > { %v629_v31 = vsel %vm609_vm1, %v626_v30, -inf }
 0x1af   : > { %630 = vmax.xlane.f32.xlu1 %v629_v31 }
 0x1b3   : > { %v627_v32 = vpop.f32.mrf.mxu1  ;;  %v739_v33 = vpop.f32.mrf.mxu0 }
 0x1b4   : > { %v740_v34 = vadd.f32 %v739_v33, %v595_v28 }
 0x1b6   : > { %v743_v35 = vsel %vm609_vm1, %v740_v34, -inf }
 0x1b7   : > { %744 = vmax.xlane.f32.xlu1 %v743_v35 }
 0x1b9   : > { %v683_v36 = vpop.f32.mrf.mxu3 }
 0x1ba   : > { %v684_v37 = vadd.f32 %v683_v36, %v595_v28 }
 0x1bb   : > { %v741_v38 = vpop.f32.mrf.mxu0 }
 0x1bc   : > { %v687_v39 = vsel %vm609_vm1, %v684_v37, -inf }
 0x1bd   : > { %688 = vmax.xlane.f32.xlu0 %v687_v39  ;;  %v1327_v39 = vld [vmem:[%s1850_s4] ss:$0 sm:$0xff] }
 0x1c1   : > { %v685_v40 = vpop.f32.mrf.mxu3 }
 0x1c9   : > { %v795_v41 = vpop.f32.mrf.mxu3 }
 0x1ca   : > { %v796_v42 = vadd.f32 %v795_v41, %v595_v28  ;;  %v1230_v28 = vld [vmem:[%s1849_s3] sm:$0xff] }
 0x1cb   : > { %875 = vmatpush.bf16.msra.mxu0 %v1230_v28 }
 0x1cc   : > { %v799_v43 = vsel %vm609_vm1, %v796_v42, -inf }
 0x1cd   : > { %800 = vmax.xlane.f32.xlu2 %v799_v43 }
 0x1d0   : > { %753 = vrot.lane.b32.xlu1 %v1727_v8, %s1532_s18  ;;  %s1170_s18 = sshll.u32 %s540_s16, 3 }
 0x1d1   : > { %809 = vrot.lane.b32.xlu0 %v1727_v8, %s1533_s17  ;;  %v797_v44 = vpop.f32.mrf.mxu3  ;;  %s1225_s17 = sshll.u32 %s1639_s22, 3  ;;  %s542_s29 = scalar_lea.vmem [#allocation8], %s1170_s18 }
 0x1d2   : > { %s1056_s5 = scalar_lea.hbm %s1861_s15, %s1225_s17  ;;  %s1058_s22 = sshll.u32 %s542_s29, 4  ;;  %s1059_s22 = int_to_ptr.vmem [resolvable:$true] %s1058_s22 }
 0x1d3   : > { %s1060_s30 = sshll.u32 %s1056_s5, 4  ;;  %s1466_s18 = scalar_lea.hbm %s1861_s15, 16  ;;  %s1061_s30 = int_to_ptr.hbm [resolvable:$true] %s1060_s30 }
 0x1d4   : > { %s1460_s26 = sshra.s32 %s1061_s30, 4  ;;  %s1461_s26 = int_to_ptr.hbm [resolvable:$true] %s1460_s26 }
 0x1d5   : > { %s1462_s17 = scalar_lea.hbm %s1461_s26, 8  ;;  %p1467_p3 = scmp.lt.s32.totalorder %s1461_s26, %s1861_s15 }
 0x1d6   : > { %p1463_p0 = scmp.ne.s32.totalorder %s1461_s26, %s1462_s17  ;;  %p1468_p4 = scmp.lt.s32.totalorder %s1466_s18, %s1462_s17 }
 0x1d8   : > { %p1464_p1 = pnand %p1463_p0, %p1656_p5  ;;  %p1469_p7 = por %p1468_p4, %p1467_p3 }
 0x1da   : > { %p1465_p2 = pneg %p1464_p1 }
 0x1dc   : > { %p1470_p8 = pnand %p1469_p7, %p1465_p2 }
 0x222   : > { %v631_v45 = vpop.xlane.xlu1 %630 }
 0x223   : > { %v632_v46 = vsub.f32 %v626_v30, %v631_v45  ;;  %v1537_v45 = vmov 32.0  }
 0x225   : > { %v633_v47 = vmul.f32 1.442695, %v632_v46 }
 0x227   : > { %1334 = vpow2.f32 %v633_v47 }
 0x22a   : > { %v745_v50 = vpop.xlane.xlu1 %744 }
 0x22b   : > { %v746_v53 = vsub.f32 %v740_v34, %v745_v50 }
 0x22d   : > { %v1335_v48 = vpop.eup %1334  ;;  %v747_v55 = vmul.f32 1.442695, %v746_v53 }
 0x22e   : > { %v638_v49 = vpack.c.bf16 %v1335_v48, %v1335_v48  ;;  %v635_v8 = vsel %vm609_vm1, %v1335_v48, 0.0 }
 0x230   : > { %v689_v51 = vpop.xlane.xlu0 %688  ;;  %1182 = vmatmul.msk.bf16.vlgmr.msra.gmra.mxu2 %vm609_vm1, %v638_v49 }
 0x231   : > { %v690_v52 = vsub.f32 %v684_v37, %v689_v51 }
 0x233   : > { %v691_v54 = vmul.f32 1.442695, %v690_v52 }
 0x235   : > { %1336 = vpow2.f32 %v691_v54 }
 0x236   : > { %1338 = vpow2.f32 %v747_v55 }
 0x23b   : > { %v1337_v56 = vpop.eup %1336 }
 0x23c   : > { %v693_v57 = vsel %vm609_vm1, %v1337_v56, 0.0  ;;  %v696_v58 = vpack.c.bf16 %v1337_v56, %v1337_v56  ;;  %v1339_v60 = vpop.eup %1338 }
 0x23d   : > { %694 = vadd.xlane.f32.xlu2 %v693_v57  ;;  %v749_v4 = vsel %vm609_vm1, %v1339_v60, 0.0  ;;  %v752_v5 = vpack.c.bf16 %v1339_v60, %v1339_v60  ;;  %v1232_v57 = vld [vmem:[#allocation7] sm:$0xff] }
 0x240   : > { %v801_v59 = vpop.xlane.xlu2 %800  ;;  %1184 = vmatmul.msk.bf16.vlgmr.msrb.gmra.mxu2 %vm609_vm1, %v696_v58  ;;  %v1237_v58 = vld [vmem:[%s1857_s11 + $0x18] sm:$0xff] }
 0x241   : > { %v802_v61 = vsub.f32 %v796_v42, %v801_v59  ;;  %1004 = vmatpush.bf16.msra.mxu3 %v1237_v58 }
 0x242   : > { %v754_v62 = vpop.permute.xlu1 %753 }
 0x243   : > { %v803_v63 = vmul.f32 1.442695, %v802_v61  ;;  %v810_v0 = vpop.permute.xlu0 %809  ;;  %v759_v1 = vsel %vm644_vm2, %v754_v62, 0  ;;  %v1236_v61 = vld [vmem:[%s1857_s11 + $0x10] sm:$0xff] }
 0x244   : > { %v815_v3 = vsel %vm644_vm2, %v810_v0, 0  ;;  %768 = vmatpush.bf16.msrb.mxu1 %v759_v1 }
 0x245   : > { %1340 = vpow2.f32 %v803_v63  ;;  %824 = vmatpush.bf16.msra.mxu2 %v815_v3  ;;  %750 = vadd.xlane.f32.xlu2 %v749_v4 }
 0x246   : > { %1005 = vmatpush.bf16.msra.mxu3 %v1236_v61 }
 0x247   : > { %1186 = vmatmul.msk.bf16.vlgmr.msrb.gmra.mxu1 %vm609_vm1, %v752_v5 }
 0x24b   : > { %v1341_v6 = vpop.eup %1340 }
 0x24c   : > { %v805_v7 = vsel %vm609_vm1, %v1341_v6, 0.0  ;;  %v808_v9 = vpack.c.bf16 %v1341_v6, %v1341_v6  ;;  %v1328_v6 = vld [vmem:[%s1853_s7] ss:$0 sm:$0xff] }
 0x24d   : > { %806 = vadd.xlane.f32.xlu0 %v805_v7  ;;  %636 = vadd.xlane.f32.xlu2 %v635_v8  ;;  %v1329_v8 = vld [vmem:[%s1854_s8] ss:$0 sm:$0xff] }
 0x250   : > { %1188 = vmatmul.msk.bf16.vlgmr.msra.gmra.mxu2 %vm609_vm1, %v808_v9 }
 0x2b0   : > { %v695_v10 = vpop.xlane.xlu2 %694 }
 0x2b1   : > { %1342 = vrcp.f32 %v695_v10 }
 0x2b3   : > { %v657_v11 = vpop.f32.mrf.mxu2 }
 0x2b7   : > { %v1343_v14 = vpop.eup %1342 }
 0x2b8   : > { %v751_v12 = vpop.xlane.xlu2 %750 }
 0x2b9   : > { %1344 = vrcp.f32 %v751_v12 }
 0x2bb   : > { %v659_v13 = vpop.f32.mrf.mxu2 }
 0x2bc   : > { %v1235_v13 = vld [vmem:[%s1857_s11 + $0x8] sm:$0xff] }
 0x2bd   : > { %1006 = vmatpush.bf16.msra.mxu3 %v1235_v13 }
 0x2bf   : > { %v1345_v16 = vpop.eup %1344 }
 0x2c0   : > { %v807_v20 = vpop.xlane.xlu0 %806  ;;  %v637_v29 = vpop.xlane.xlu2 %636 }
 0x2c1   : > { %1346 = vrcp.f32 %v807_v20 }
 0x2c2   : > { %1348 = vrcp.f32 %v637_v29 }
 0x2c3   : > { %v714_v15 = vpop.f32.mrf.mxu2  ;;  %1350 = vrcp.f32 %v1537_v45 }
 0x2c4   : > { %v719_v17 = vmul.f32 %v1343_v14, %v714_v15  ;;  %v770_v18 = vpop.f32.mrf.mxu1  ;;  %v1234_v14 = vld [vmem:[%s1857_s11] sm:$0xff] }
 0x2c5   : > { %v775_v19 = vmul.f32 %v1345_v16, %v770_v18  ;;  %1007 = vmatpush.bf16.msra.mxu3 %v1234_v14  ;;  %v1330_v15 = vld [vmem:[%s1856_s10] ss:$0 sm:$0xff] }
 0x2c6   : > { %833 = vrot.lane.b32.xlu1 %v719_v17, %s1534_s25 }
 0x2c7   : > { %837 = vrot.lane.b32.xlu2 %v775_v19, %s1535_s20  ;;  %v1347_v23 = vpop.eup %1346 }
 0x2c8   : > { %v1349_v30 = vpop.eup %1348 }
 0x2c9   : > { %v662_v32 = vmul.f32 %v1349_v30, %v657_v11  ;;  %v1351_v46 = vpop.eup %1350 }
 0x2ca   : > { %v886_v47 = vmul.f32 32.0, %v1351_v46  ;;  %vm890_vm5 = vweird.f32 %v1351_v46 }
 0x2cb   : > { %v716_v21 = vpop.f32.mrf.mxu2 }
 0x2cc   : > { %v772_v22 = vpop.f32.mrf.mxu1  ;;  %v887_v48 = vsub.f32 1.0, %v886_v47  ;;  %v1331_v21 = vld [vmem:[%s1858_s12] ss:$0 sm:$0xff] }
 0x2ce   : > { %v888_v49 = vmul.f32 %v1351_v46, %v887_v48 }
 0x2d0   : > { %v889_v50 = vadd.f32 %v1351_v46, %v888_v49 }
 0x2d2   : > { %v891_v51 = vsel %vm890_vm5, %v1351_v46, %v889_v50 }
 0x2d3   : > { %v826_v24 = vpop.f32.mrf.mxu2 }
 0x2d4   : > { %v831_v25 = vmul.f32 %v1347_v23, %v826_v24 }
 0x2d6   : > { %841 = vrot.lane.b32.xlu1 %v831_v25, %s1536_s27 }
 0x2db   : > { %v828_v26 = vpop.f32.mrf.mxu2 }
 0x321   : > { %v838_v34 = vpop.permute.xlu2 %837 }
 0x338   : > { %v834_v31 = vpop.permute.xlu1 %833 }
 0x339   : > { %v844_v33 = vsel %vm609_vm1, %v662_v32, %v834_v31 }
 0x33a   : > { %v846_v35 = vsel %vm845_vm3, %v844_v33, %v838_v34 }
 0x348   : > { %v842_v36 = vpop.permute.xlu1 %841 }
 0x349   : > { %v848_v37 = vsel %vm847_vm4, %v846_v35, %v842_v36 }
 0x34a   : > { %v849_v38 = vpack.c.bf16 %v848_v37, %v848_v37 }
 0x34c   : > { %1197 = vmatmul.msk.bf16.vlgmr.msra.gmra.mxu0 %vm573_vm0, %v849_v38 }
 0x3c9   : > { %v877_v40 = vpop.f32.mrf.mxu0 }
 0x3ca   : > { %v878_v41 = vadd.f32 %v1327_v39, %v877_v40 }
 0x3cc   : > { %v881_v42 = vadd.f32 %v878_v41, %v1722_v2  ;;  %v1233_v2 = vld [vmem:[#allocation7 + $0x8] sm:$0xff]  ;;  %v1332_v41 = vld [vmem:[%s1859_s13] ss:$0 sm:$0xff] }
 0x3cd   : > { %960 = vmatpush.bf16.msra.mxu1 %v1233_v2 }
 0x3ce   : > { %v882_v43 = vsel %vm573_vm0, %v881_v42, 0.0 }
 0x3cf   : > { %883 = vadd.xlane.f32.xlu1 %v882_v43 }
 0x3d1   : > { %v879_v44 = vpop.f32.mrf.mxu0  ;;  %961 = vmatpush.bf16.msra.mxu1 %v1232_v57 }
 0x3d2   : > { %v1333_v44 = vld [vmem:[%s1860_s14] ss:$0 sm:$0xff] }
 0x442   : > { %v884_v52 = vpop.xlane.xlu1 %883 }
 0x443   : > { %v892_v53 = vmul.f32 %v891_v51, %v884_v52 }
 0x445   : > { %v893_v54 = vsub.f32 %v881_v42, %v892_v53 }
 0x447   : > { %v894_v55 = vmul.f32 %v893_v54, %v893_v54 }
 0x449   : > { %v895_v56 = vsel %vm573_vm0, %v894_v55, 0.0 }
 0x44a   : > { %896 = vadd.xlane.f32.xlu2 %v895_v56 }
 0x4bd   : > { %v897_v59 = vpop.xlane.xlu2 %896 }
 0x4be   : > { %v898_v60 = vmul.f32 %v897_v59, %v891_v51 }
 0x4c0   : > { %v899_v62 = vadd.f32 1e-05, %v898_v60 }
 0x4c2   : > { %1352 = vrsqrt.f32 %v899_v62  ;;  %vm906_vm7 = vweird.f32 %v899_v62 }
 0x4c8   : > { %v1353_v63 = vpop.eup %1352 }
 0x4c9   : > { %v901_v0 = vmul.f32 %v1353_v63, %v899_v62  ;;  %vm907_vm6 = vweird.f32 %v1353_v63 }
 0x4ca   : > { %vm908_vm8 = vmor %vm906_vm7, %vm907_vm6 }
 0x4cb   : > { %v902_v1 = vmul.f32 %v1353_v63, %v901_v0 }
 0x4cd   : > { %v903_v3 = vmul.f32 0.5, %v902_v1 }
 0x4cf   : > { %v904_v4 = vsub.f32 1.5, %v903_v3 }
 0x4d1   : > { %v905_v5 = vmul.f32 %v1353_v63, %v904_v4 }
 0x4d3   : > { %v909_v7 = vsel %vm908_vm8, %v1353_v63, %v905_v5 }
 0x4d4   : > { %v910_v9 = vmul.f32 %v909_v7, %v893_v54 }
 0x4d6   : > { %v914_v10 = vmul.f32 %v1328_v6, %v910_v9 }
 0x4d8   : > { %v918_v11 = vadd.f32 %v1329_v8, %v914_v10 }
 0x4da   : > { %v935_v12 = vpack.c.bf16 %v918_v11, %v918_v11 }
 0x4dc   : > { %1206 = vmatmul.msk.bf16.vlgmr.msra.gmra.mxu1 %vm573_vm0, %v935_v12 }
 0x559   : > { %v963_v16 = vpop.f32.mrf.mxu1 }
 0x55a   : > { %v964_v17 = vadd.f32 %v1330_v15, %v963_v16 }
 0x55c   : > { %v967_v18 = vmax.f32 %v964_v17, 0.0 }
 0x55e   : > { %v968_v19 = vpack.c.bf16 %v967_v18, %v967_v18 }
 0x560   : > { %1223 = vmatmul.msk.bf16.vlgmr.msra.gmra.mxu3 %vm996_vm9, %v968_v19 }
 0x561   : > { %v965_v20 = vpop.f32.mrf.mxu1 }
 0x5e3   : > { %v1009_v22 = vpop.f32.mrf.mxu3 }
 0x5e4   : > { %v1010_v23 = vadd.f32 %v1331_v21, %v1009_v22 }
 0x5e6   : > { %v1013_v24 = vadd.f32 %v1010_v23, %v918_v11 }
 0x5e8   : > { %v1014_v25 = vsel %vm573_vm0, %v1013_v24, 0.0 }
 0x5e9   : > { %1015 = vadd.xlane.f32.xlu0 %v1014_v25 }
 0x5eb   : > { %v1011_v26 = vpop.f32.mrf.mxu3 }
 0x65c   : > { %v1016_v27 = vpop.xlane.xlu0 %1015 }
 0x65d   : > { %v1017_v28 = vmul.f32 %v1016_v27, %v891_v51 }
 0x65f   : > { %v1018_v29 = vsub.f32 %v1013_v24, %v1017_v28 }
 0x661   : > { %v1019_v30 = vmul.f32 %v1018_v29, %v1018_v29 }
 0x663   : > { %v1020_v31 = vsel %vm573_vm0, %v1019_v30, 0.0 }
 0x664   : > { %1021 = vadd.xlane.f32.xlu0 %v1020_v31 }
 0x6d7   : > { %v1022_v32 = vpop.xlane.xlu0 %1021 }
 0x6d8   : > { %v1023_v33 = vmul.f32 %v1022_v32, %v891_v51 }
 0x6da   : > { %v1024_v34 = vadd.f32 1e-05, %v1023_v33 }
 0x6dc   : > { %1354 = vrsqrt.f32 %v1024_v34  ;;  %vm1031_vm11 = vweird.f32 %v1024_v34 }
 0x6e2   : > { %v1355_v35 = vpop.eup %1354 }
 0x6e3   : > { %v1026_v36 = vmul.f32 %v1355_v35, %v1024_v34  ;;  %vm1032_vm10 = vweird.f32 %v1355_v35 }
 0x6e4   : > { %vm1033_vm12 = vmor %vm1031_vm11, %vm1032_vm10 }
 0x6e5   : > { %v1027_v37 = vmul.f32 %v1355_v35, %v1026_v36 }
 0x6e7   : > { %v1028_v38 = vmul.f32 0.5, %v1027_v37 }
 0x6e9   : > { %v1029_v39 = vsub.f32 1.5, %v1028_v38 }
 0x6eb   : > { %v1030_v40 = vmul.f32 %v1355_v35, %v1029_v39 }
 0x6ed   : > { %v1034_v42 = vsel %vm1033_vm12, %v1355_v35, %v1030_v40 }
 0x6ee   : > { %v1035_v43 = vmul.f32 %v1034_v42, %v1018_v29 }
 0x6f0   : > { %v1039_v45 = vmul.f32 %v1332_v41, %v1035_v43 }
 0x6f2   : > { %v1043_v46 = vadd.f32 %v1333_v44, %v1039_v45 }
 0x6f4   : > { %1044 = vst.msk [vmem:[%s542_s29] sm:$0xff] %vm573_vm0, %v1043_v46 }
 0x6f5   : > { %1473 = shalt.err (!%p1470_p8)
}
 0x6f6   : > { %1250 = dma.vmem_to_hbm [thread:$0]  (%p1656_p5), %s1059_s22, 128, %s1061_s30, %s1046_s23  }
 0x6f7 PF: > { %s1882_s16 = sld [smem:[#allocation14_spill]] }
 0x6f8   : > { %s1883_s5 = sld [smem:[#allocation12_spill]] }
 0x6fd   : > { %p1272_p9 = scmp.ge.s32.totalorder %s1882_s16, 2 }
 0x6fe   : > { %s1072_s24 = sand.u32 1, %s1883_s5  }
 0x6ff   : > { %p1263_p10 = pnand %p1272_p9, %p1660_p6  ;;  %s1073_s29 = scalar_lea.sflag [#allocation4], %s1072_s24 }
 0x701   : > { %p1264_p11 = pneg %p1263_p10 }
 0x703   : > { %1499 = dma.done.wait (%p1264_p11), %s1073_s29, 128  }
 0x704   : > { %1501 = vsyncadd (%p1264_p11), %s1073_s29, 4294967168  ;;  %s1885_s21 = sld [smem:[#allocation15_spill]]  ;;  %s1888_s18 = smov %s1508_s19 }
 0x705   : > { %s1886_s26 = sld [smem:[#allocation13_spill]] }
 0x706   : > { %s1887_s20 = sld [smem:[#allocation16_spill]] }
 0x70a   : > { %p27_p12 = scmp.ge.s32.totalorder %s1885_s21, 4  }
 0x70b   : > { %s1889_s19 = smov %s1886_s26 }
 0x70c   :  { %29 = sbr.rel (!%p27_p12) target bundleno = 8 (0x8), region = 131 }
 0x711   :  { %1079 = vsyncpa [#allocation3], 1 }
 0x712   :  { %1081 = vsyncpa [#allocation3 + $0x1], 1 }
 0x713   :  { %1082 = vsyncpa [#allocation6], 1 }
 0x714   :  { %1083 = vsyncpa [#allocation4], 1 }
 0x715   :  { %1085 = vsyncpa [#allocation4 + $0x1], 1 }

</bundles_post_ra>
